<compile_context>
chip_gen: v7x
topology: tpu7x:2x2x1
jax: 0.10.0
libtpu: 0.0.40
codegen_flags: <defaults>
</compile_context>

<pallas_src>
import functools

import jax
import jax.numpy as jnp
from jax.experimental import pallas as pl
from jax.experimental.pallas import tpu as pltpu

LANE = 128
SUBLANE = 8
MAX_TILE_ROWS = 8192   # 4 MiB f32 / input block -> <= ~32 MiB double-buffered (v7x-safe)


def _bce_kernel(p_ref, t_ref, o_ref, *, aligned_count, tile_rows, tiles_per_core,
                binary_truth):
    c = pl.program_id(0)   # "parallel" axis (per-core partial sums)
    t = pl.program_id(1)   # "arbitrary" reduction axis

    # Zero this core's resident (8, 128) partial-sum output block at the start of its sweep.
    @pl.when(t == 0)
    def _():
        o_ref[...] = jnp.zeros_like(o_ref)

    p = p_ref[...].astype(jnp.float32)

    if binary_truth:
        # Exact for y in {0,1}: one EUP log per element instead of two, no VPU muls.
        term = jnp.log(jnp.where(t_ref[...] >= 0.5, p, 1.0 - p))
    else:
        y = t_ref[...].astype(jnp.float32)
        # Same elementwise expression as the PyTorch module.
        term = y * jnp.log(p) + (1.0 - y) * jnp.log(1.0 - p)

    # Interior-ness derived from the (small) tile index -> no int32 flat-offset overflow.
    tile_elems = tile_rows * LANE
    n_full = aligned_count // tile_elems                      # python int
    rem_rows = (aligned_count - n_full * tile_elems) // LANE  # python int (aligned_count % LANE == 0)
    tile_idx = c * tiles_per_core + t                         # small int32

    def accumulate(vals):
        if tile_rows % SUBLANE == 0:
            # vreg-aligned, VALU-only reduction into the resident (8, 128) accumulator.
            o_ref[...] += jnp.sum(vals.reshape(-1, SUBLANE, LANE), axis=0)
        else:
            # Tiny-input fallback (single block with < 8 rows): one sublane reduction.
            o_ref[0:1, :] += jnp.sum(vals, axis=0, keepdims=True)

    # Interior tiles: no masking work, just the partial-sum update.
    @pl.when(tile_idx < n_full)
    def _():
        accumulate(term)

    # Tail / clamped-overflow tiles: mask invalid rows (the where also discards any NaN/Inf
    # computed from garbage rows of a partial edge block).
    @pl.when(tile_idx >= n_full)
    def _():
        row = jax.lax.broadcasted_iota(jnp.int32, (tile_rows, LANE), 0)
        valid = jnp.logical_and(tile_idx == n_full, row < rem_rows)
        accumulate(jnp.where(valid, term, 0.0))


def _default_num_cores():
    # v7x has 2 TensorCores per chip; v5e/v6e have 1 (there the split is pure overhead).
    try:
        kind = jax.devices()[0].device_kind.lower()
    except Exception:
        return 1
    return 2 if ("v7" in kind or "7x" in kind) else 1


def my_cross_entropy_loss(predit, truth, *, tile_rows=4096, num_cores=None,
                          binary_truth=False):
    """JAX/Pallas equivalent of MyCrossEntropyLoss.forward.

    binary_truth=True asserts truth values are in {0, 1}: the truth stream is shipped as
    bf16 (halving its HBM bytes) and the kernel uses a single-log select fast path. Both are
    exact for binary labels. Leave False for soft labels (exact PyTorch formula).
    """
    assert predit.shape == truth.shape
    total = predit.size

    flat_p = predit.reshape(-1)
    flat_t = truth.reshape(-1)
    if binary_truth:
        flat_t = flat_t.astype(jnp.bfloat16)   # exact for {0,1}

    rows = total // LANE
    aligned = rows * LANE

    # Ragged (<128-element) lane tail: tiny jnp epilogue on a small slice — never
    # materialize padded O(N) copies of the inputs.
    tail_sum = jnp.float32(0.0)
    if aligned < total:
        tp = flat_p[aligned:].astype(jnp.float32)
        tt = flat_t[aligned:].astype(jnp.float32)
        tail_sum = jnp.sum(tt * jnp.log(tp) + (1.0 - tt) * jnp.log(1.0 - tp))

    if rows == 0:   # fewer than 128 elements: nothing for the kernel to do
        return -(tail_sum / jnp.float32(total))

    p2 = flat_p[:aligned].reshape(rows, LANE)
    t2 = flat_t[:aligned].reshape(rows, LANE)

    # bf16 truth wants a 16-row sublane granule; f32 wants 8.
    granule = 16 if t2.dtype.itemsize == 2 else SUBLANE
    tile_rows = min(tile_rows, MAX_TILE_ROWS, rows)
    if tile_rows % granule != 0:
        if rows >= granule:
            tile_rows = max(granule, (tile_rows // granule) * granule)
        else:
            tile_rows = rows   # tiny array: one full-extent block (allowed for any row count)

    n_tiles = pl.cdiv(rows, tile_rows)
    if num_cores is None:
        num_cores = _default_num_cores()
    n_par = max(1, min(num_cores, n_tiles))
    tiles_per_core = pl.cdiv(n_tiles, n_par)

    # Clamp overflow grid cells (when n_tiles is not a multiple of n_par) to the last valid
    # block; their contribution is zeroed by the in-kernel mask.
    def in_map(c, t):
        return (jnp.minimum(c * tiles_per_core + t, n_tiles - 1), 0)

    # Scoped-VMEM limit derived from the actual (double-buffered) block bytes with ~2x
    # headroom, capped under v7x's 64 MiB physical VMEM.
    block_bytes = tile_rows * LANE * (p2.dtype.itemsize + t2.dtype.itemsize)
    vmem_limit = int(min(48 * 1024 * 1024,
                         max(16 * 1024 * 1024, 4 * block_bytes + 1024 * 1024)))

    kernel = functools.partial(
        _bce_kernel,
        aligned_count=aligned,
        tile_rows=tile_rows,
        tiles_per_core=tiles_per_core,
        binary_truth=binary_truth,
    )

    partials = pl.pallas_call(
        kernel,
        out_shape=jax.ShapeDtypeStruct((n_par * SUBLANE, LANE), jnp.float32),
        grid_spec=pl.GridSpec(
            grid=(n_par, tiles_per_core),
            in_specs=[
                pl.BlockSpec((tile_rows, LANE), in_map),
                pl.BlockSpec((tile_rows, LANE), in_map),
            ],
            out_specs=pl.BlockSpec((SUBLANE, LANE), lambda c, t: (c, 0)),
        ),
        compiler_params=pltpu.CompilerParams(
            dimension_semantics=("parallel", "arbitrary"),
            vmem_limit_bytes=vmem_limit,
        ),
    )(p2, t2)

    # Epilogue: one small cross-lane reduction + divide, outside the hot loop.
    return -((jnp.sum(partials) + tail_sum) / jnp.float32(total))


if __name__ == "__main__":
    key = jax.random.PRNGKey(0)
    ks = jax.random.split(key, 6)

    def reference(p, t):
        p = p.astype(jnp.float32)
        t = t.astype(jnp.float32)
        return -jnp.mean(t * jnp.log(p) + (1.0 - t) * jnp.log(1.0 - p))

    # 1) canonical small NCHW segmentation-style case: f32 probabilities, binary truth,
    #    bf16 + single-log fast path.
    shape1 = (2, 4, 16, 16)
    pred1 = jax.nn.sigmoid(jax.random.normal(ks[0], shape1, dtype=jnp.float32))
    truth1 = (jax.random.uniform(ks[1], shape1) > 0.5).astype(jnp.float32)
    ref1 = reference(pred1, truth1)
    loss1 = jax.block_until_ready(my_cross_entropy_loss(pred1, truth1, binary_truth=True))
    assert jnp.allclose(loss1, ref1, rtol=1e-5, atol=1e-6), (loss1, ref1)
    # same inputs through the general (two-log, f32 truth) path
    loss1b = jax.block_until_ready(my_cross_entropy_loss(pred1, truth1, binary_truth=False))
    assert jnp.allclose(loss1b, ref1, rtol=1e-5, atol=1e-6), (loss1b, ref1)

    # 2) ragged element count (not a multiple of 128) with soft labels: exercises the tiny
    #    lane-tail epilogue + the general formula + the <8-row full-extent block path.
    shape2 = (3, 5, 67)
    pred2 = jax.nn.sigmoid(jax.random.normal(ks[2], shape2, dtype=jnp.float32))
    truth2 = jax.random.uniform(ks[3], shape2, dtype=jnp.float32)
    ref2 = reference(pred2, truth2)
    loss2 = jax.block_until_ready(my_cross_entropy_loss(pred2, truth2))
    assert jnp.allclose(loss2, ref2, rtol=1e-5, atol=1e-6), (loss2, ref2)

    # 3) multi-tile, forced 2-way core split with an odd tile count (clamped overflow cell).
    shape3 = (3, 4, 32, 32)
    pred3 = jax.nn.sigmoid(jax.random.normal(ks[4], shape3, dtype=jnp.float32))
    truth3 = (jax.random.uniform(ks[5], shape3) > 0.5).astype(jnp.float32)
    ref3 = reference(pred3, truth3)
    loss3 = jax.block_until_ready(
        my_cross_entropy_loss(pred3, truth3, tile_rows=32, num_cores=2, binary_truth=True))
    assert jnp.allclose(loss3, ref3, rtol=1e-5, atol=1e-6), (loss3, ref3)

    print("KERNEL_OK")
</pallas_src>

<mosaic_0001>
module attributes {stable_mosaic.version = 11 : i64} {
  func.func @_bce_kernel(%arg0: i32, %arg1: i32, %arg2: memref<16x128xf32, #tpu.memory_space<vmem>>, %arg3: memref<16x128xbf16, #tpu.memory_space<vmem>>, %arg4: memref<8x128xf32, #tpu.memory_space<vmem>>) attributes {dimension_semantics = [#tpu.dimension_semantics<parallel>, #tpu.dimension_semantics<arbitrary>], iteration_bounds = array<i64: 1, 1>, scalar_prefetch = 0 : i64, scratch_operands = 0 : i64, tpu.core_type = #tpu.core_type<tc>, window_params = [{transform_indices = @transform_0, window_bounds = array<i64: 16, 128>}, {transform_indices = @transform_1, window_bounds = array<i64: 16, 128>}, {transform_indices = @transform_2, window_bounds = array<i64: 8, 128>}]} {
    %c0_i32 = arith.constant 0 : i32
    %0 = arith.cmpi eq, %arg1, %c0_i32 : i32
    %1 = arith.extui %0 : i1 to i32
    %c0_i32_0 = arith.constant 0 : i32
    %2 = arith.cmpi ne, %1, %c0_i32_0 : i32
    scf.if %2 {
      %cst_9 = arith.constant 0.000000e+00 : f32
      %19 = vector.broadcast %cst_9 : f32 to vector<8x128xf32>
      %c0_10 = arith.constant 0 : index
      %c0_11 = arith.constant 0 : index
      %20 = vector.load %arg4[%c0_10, %c0_11] : memref<8x128xf32, #tpu.memory_space<vmem>>, vector<8x128xf32>
      tpu.vector_store %arg4[%c0_10, %c0_11], %19 {strides = array<i32>} : memref<8x128xf32, #tpu.memory_space<vmem>>, vector<8x128xf32>,
    } else {
    }
    %c0 = arith.constant 0 : index
    %c0_1 = arith.constant 0 : index
    %3 = vector.load %arg2[%c0, %c0_1] : memref<16x128xf32, #tpu.memory_space<vmem>>, vector<16x128xf32>
    %c0_2 = arith.constant 0 : index
    %c0_3 = arith.constant 0 : index
    %4 = vector.load %arg3[%c0_2, %c0_3] : memref<16x128xbf16, #tpu.memory_space<vmem>>, vector<16x128xbf16>
    %cst = arith.constant 5.000000e-01 : bf16
    %5 = vector.broadcast %cst : bf16 to vector<16x128xbf16>
    %6 = arith.cmpf oge, %4, %5 : vector<16x128xbf16>
    %cst_4 = arith.constant 1.000000e+00 : f32
    %7 = vector.broadcast %cst_4 : f32 to vector<16x128xf32>
    %8 = arith.subf %7, %3 : vector<16x128xf32>
    %9 = arith.select %6, %3, %8 : vector<16x128xi1>, vector<16x128xf32>
    %10 = math.log %9 : vector<16x128xf32>
    %c1_i32 = arith.constant 1 : i32
    %11 = arith.muli %arg0, %c1_i32 : i32
    %12 = arith.addi %11, %arg1 : i32
    %c1_i32_5 = arith.constant 1 : i32
    %13 = arith.cmpi slt, %12, %c1_i32_5 : i32
    %14 = arith.extui %13 : i1 to i32
    %c0_i32_6 = arith.constant 0 : i32
    %15 = arith.cmpi ne, %14, %c0_i32_6 : i32
    scf.if %15 {
      %c0_9 = arith.constant 0 : index
      %c0_10 = arith.constant 0 : index
      %19 = vector.load %arg4[%c0_9, %c0_10] : memref<8x128xf32, #tpu.memory_space<vmem>>, vector<8x128xf32>
      %20 = vector.shape_cast %10 : vector<16x128xf32> to vector<2x8x128xf32>
      %cst_11 = arith.constant dense<0.000000e+00> : vector<8x128xf32>
      %21 = vector.multi_reduction <add>, %20, %cst_11 [0] : vector<2x8x128xf32> to vector<8x128xf32>
      %22 = arith.addf %19, %21 : vector<8x128xf32>
      %c0_12 = arith.constant 0 : index
      %c0_13 = arith.constant 0 : index
      %23 = vector.load %arg4[%c0_12, %c0_13] : memref<8x128xf32, #tpu.memory_space<vmem>>, vector<8x128xf32>
      tpu.vector_store %arg4[%c0_12, %c0_13], %22 {strides = array<i32>} : memref<8x128xf32, #tpu.memory_space<vmem>>, vector<8x128xf32>,
    } else {
    }
    %c1_i32_7 = arith.constant 1 : i32
    %16 = arith.cmpi sge, %12, %c1_i32_7 : i32
    %17 = arith.extui %16 : i1 to i32
    %c0_i32_8 = arith.constant 0 : i32
    %18 = arith.cmpi ne, %17, %c0_i32_8 : i32
    scf.if %18 {
      %19 = tpu.iota {dimensions = array<i32: 0>} : vector<16x128xi32>
      %c1_i32_9 = arith.constant 1 : i32
      %20 = arith.cmpi eq, %12, %c1_i32_9 : i32
      %c0_i32_10 = arith.constant 0 : i32
      %21 = vector.broadcast %c0_i32_10 : i32 to vector<16x128xi32>
      %22 = arith.cmpi slt, %19, %21 : vector<16x128xi32>
      %23 = vector.broadcast %20 : i1 to vector<16x128xi1>
      %24 = arith.andi %23, %22 : vector<16x128xi1>
      %cst_11 = arith.constant 0.000000e+00 : f32
      %25 = vector.broadcast %cst_11 : f32 to vector<16x128xf32>
      %26 = arith.select %24, %10, %25 : vector<16x128xi1>, vector<16x128xf32>
      %c0_12 = arith.constant 0 : index
      %c0_13 = arith.constant 0 : index
      %27 = vector.load %arg4[%c0_12, %c0_13] : memref<8x128xf32, #tpu.memory_space<vmem>>, vector<8x128xf32>
      %28 = vector.shape_cast %26 : vector<16x128xf32> to vector<2x8x128xf32>
      %cst_14 = arith.constant dense<0.000000e+00> : vector<8x128xf32>
      %29 = vector.multi_reduction <add>, %28, %cst_14 [0] : vector<2x8x128xf32> to vector<8x128xf32>
      %30 = arith.addf %27, %29 : vector<8x128xf32>
      %c0_15 = arith.constant 0 : index
      %c0_16 = arith.constant 0 : index
      %31 = vector.load %arg4[%c0_15, %c0_16] : memref<8x128xf32, #tpu.memory_space<vmem>>, vector<8x128xf32>
      tpu.vector_store %arg4[%c0_15, %c0_16], %30 {strides = array<i32>} : memref<8x128xf32, #tpu.memory_space<vmem>>, vector<8x128xf32>,
    } else {
    }
    return
  }
  func.func @transform_0(%arg0: i32, %arg1: i32) -> (i32, i32) {
    %c1_i32 = arith.constant 1 : i32
    %0 = arith.muli %arg0, %c1_i32 : i32
    %1 = arith.addi %0, %arg1 : i32
    %c0_i32 = arith.constant 0 : i32
    %2 = arith.minsi %1, %c0_i32 : i32
    %c0_i32_0 = arith.constant 0 : i32
    %c0_i32_1 = arith.constant 0 : i32
    return %2, %c0_i32_0 : i32, i32
  }
  func.func @transform_1(%arg0: i32, %arg1: i32) -> (i32, i32) {
    %c1_i32 = arith.constant 1 : i32
    %0 = arith.muli %arg0, %c1_i32 : i32
    %1 = arith.addi %0, %arg1 : i32
    %c0_i32 = arith.constant 0 : i32
    %2 = arith.minsi %1, %c0_i32 : i32
    %c0_i32_0 = arith.constant 0 : i32
    %c0_i32_1 = arith.constant 0 : i32
    return %2, %c0_i32_0 : i32, i32
  }
  func.func @transform_2(%arg0: i32, %arg1: i32) -> (i32, i32) {
    %c0_i32 = arith.constant 0 : i32
    %c0_i32_0 = arith.constant 0 : i32
    return %arg0, %c0_i32 : i32, i32
  }
}

</mosaic_0001>

<bundles_post_ra>
// kernel: tpu_custom_call.1
= control target key start
LH: loop header
LB: loop body
LE: loop exit
PB: predicated region body
PF: predicated region fallthrough
CT: control target
= control target key end

     0   :  { %7 = vsyncpa [#allocation3], 0  ;;  %s282_s0 = inlined_call_operand.hbm [shape: f32[16,128], index: 0, kind: input, shape index: {}]   ;;  %s283_s1 = inlined_call_operand.hbm [shape: bf16[16,128], index: 1, kind: input, shape index: {}]   ;;  %s284_s2 = inlined_call_operand.hbm [shape: f32[8,128], index: 2, kind: output, shape index: {}]  }
   0x1   :  { %8 = vsyncpa [#allocation6], 0 }
   0x2   :  { %9 = vsyncpa [#allocation4], 0  ;;  %s223_s9 = smov [#allocation2]   ;;  %s151_s13 = scalar_lea.hbm %s282_s0, 256 }
   0x3   :  { %s21_s10 = sshll.u32 %s223_s9, 4  ;;  %p152_p0 = scmp.ne.s32.totalorder %s282_s0, %s151_s13  ;;  %s22_s10 = int_to_ptr.vmem [resolvable:$true] %s21_s10 }
   0x4   :  { %p155_p1 = scmp.lt.u32.totalorder %s151_s13, %s282_s0 }
   0x6   :  { %p157_p2 = pnand %p155_p1, %p152_p0 }
   0x8   :  { %160 = shalt.err (!%p157_p2)
}
   0x9   :  { %s161_s18 = scalar_lea.vmem %s22_s10, 256  ;;  %p166_p4 = scmp.lt.s32.totalorder %s22_s10, %s22_s10 }
   0xa   :  { %p162_p3 = scmp.ne.s32.totalorder %s22_s10, %s161_s18  ;;  %p167_p5 = scmp.lt.s32.totalorder %s161_s18, %s161_s18 }
   0xc   :  { %p168_p6 = por %p167_p5, %p166_p4 }
   0xe   :  { %p169_p7 = pnand %p168_p6, %p162_p3 }
  0x10   :  { %172 = shalt.err (!%p169_p7)
}
  0x11   :  { %s224_s19 = smov 128   ;;  %s225_s20 = smov 8  }
  0x12   :  { %27 = dma.hbm_to_vmem [thread:$0]  %s282_s0, 256, %s22_s10, [#allocation3], %s224_s19, %s224_s19, %s225_s20  }
  0x13   :  { %s226_s23 = smov [#allocation5]   ;;  %s173_s27 = scalar_lea.hbm %s283_s1, 128 }
  0x14   :  { %s39_s24 = sshll.u32 %s226_s23, 4  ;;  %p174_p8 = scmp.ne.s32.totalorder %s283_s1, %s173_s27  ;;  %s40_s24 = int_to_ptr.vmem [resolvable:$true] %s39_s24 }
  0x15   :  { %p177_p9 = scmp.lt.u32.totalorder %s173_s27, %s283_s1 }
  0x17   :  { %p179_p10 = pnand %p177_p9, %p174_p8 }
  0x19   :  { %182 = shalt.err (!%p179_p10)
}
  0x1a   :  { %s183_s4 = scalar_lea.vmem %s40_s24, 128  ;;  %p188_p12 = scmp.lt.s32.totalorder %s40_s24, %s40_s24 }
  0x1b   :  { %p184_p11 = scmp.ne.s32.totalorder %s40_s24, %s183_s4  ;;  %p189_p13 = scmp.lt.s32.totalorder %s183_s4, %s183_s4 }
  0x1d   :  { %p190_p0 = por %p189_p13, %p188_p12 }
  0x1f   :  { %p191_p1 = pnand %p190_p0, %p184_p11 }
  0x21   :  { %194 = shalt.err (!%p191_p1)
}
  0x22   :  { %s227_s0 = smov 64   ;;  %s228_s5 = smov 4  }
  0x23   :  { %45 = dma.hbm_to_vmem [thread:$0]  %s283_s1, 128, %s40_s24, [#allocation6], %s227_s0, %s227_s0, %s228_s5  }
  0x24   :  { %217 = dma.done.wait [#allocation3], 256  }
  0x25   :  { %218 = vsyncadd [#allocation3], 4294967040 }
  0x26   :  { %219 = dma.done.wait [#allocation6], 128  }
  0x27   :  { %220 = vsyncadd [#allocation6], 4294967168  ;;  %v68_v0 = vld [vmem:[#allocation2] sm:$0xff]  ;;  %v69_v1 = vld [vmem:[#allocation2 + $0x8] sm:$0xff]  ;;  %v229_v5 = vmov 0   ;;  %s230_s1 = smov [#allocation7]  }
  0x28   :  { %v70_v2 = vld [vmem:[#allocation5] sm:$0xf]  ;;  %v71_v3 = vld [vmem:[#allocation5 + $0x4] sm:$0xf]  ;;  %v74_v4 = vsub.f32 1.0, %v68_v0  ;;  %v75_v7 = vsub.f32 1.0, %v69_v1 }
  0x29   :  { %vm72_vm0 = vcmp.ge.bf16.partialorder %v70_v2, 1056980736  ;;  %vm73_vm1 = vcmp.ge.bf16.partialorder %v71_v3, 1056980736  ;;  %s124_s8 = sshll.u32 %s230_s1, 4  ;;  %s125_s8 = int_to_ptr.vmem [resolvable:$true] %s124_s8 }
  0x2a   :  { %v76_v6 = vsel %vm72_vm0, 65537, %v229_v5  ;;  %v77_v8 = vsel %vm73_vm1, 65537, %v229_v5  ;;  %s195_s9 = scalar_lea.vmem %s125_s8, 128  ;;  %p200_p3 = scmp.lt.s32.totalorder %s125_s8, %s125_s8 }
  0x2b   :  { %v78_v9 = vunpack.c.l.b16 %v76_v6  ;;  %v79_v10 = vunpack.c.l.b16 %v77_v8  ;;  %p196_p2 = scmp.ne.s32.totalorder %s125_s8, %s195_s9  ;;  %p201_p4 = scmp.lt.s32.totalorder %s195_s9, %s195_s9 }
  0x2d   :  { %vm80_vm2 = vcmp.ne.s32.totalorder %v78_v9, 0  ;;  %vm81_vm3 = vcmp.ne.s32.totalorder %v79_v10, 0  ;;  %p202_p5 = por %p201_p4, %p200_p3 }
  0x2e   :  { %v82_v11 = vsel %vm80_vm2, %v68_v0, %v74_v4  ;;  %v83_v12 = vsel %vm81_vm3, %v69_v1, %v75_v7 }
  0x2f   :  { %147 = vlog2.f32 %v82_v11  ;;  %p203_p6 = pnand %p202_p5, %p196_p2 }
  0x30   :  { %149 = vlog2.f32 %v83_v12 }
  0x39   :  { %v148_v13 = vpop.eup %147 }
  0x3a   :  { %v150_v14 = vpop.eup %149  ;;  %v85_v15 = vmul.f32 0.6931472, %v148_v13 }
  0x3b   :  { %v87_v16 = vmul.f32 0.6931472, %v150_v14 }
  0x3d   :  { %v94_v17 = vadd.f32 %v87_v16, %v85_v15 }
  0x3f   :  { %96 = vst [vmem:[#allocation7] sm:$0xff] %v94_v17 }
  0x40   :  { %206 = shalt.err (!%p203_p6)
}
  0x41   :  { %s207_s12 = scalar_lea.hbm %s284_s2, 128 }
  0x42   :  { %p208_p7 = scmp.ne.s32.totalorder %s284_s2, %s207_s12  ;;  %p211_p8 = scmp.lt.u32.totalorder %s207_s12, %s284_s2 }
  0x44   :  { %p213_p9 = pnand %p211_p8, %p208_p7 }
  0x46   :  { %216 = shalt.err (!%p213_p9)
}
  0x47   :  { %127 = dma.vmem_to_hbm [thread:$0]  %s125_s8, 128, %s284_s2, [#allocation4]  }
  0x48   :  { %221 = dma.done.wait [#allocation4], 128  }
  0x49   :  { %222 = vsyncadd [#allocation4], 4294967168 }
  0x4a   :  { %131 = vsyncpa [#allocation3], 1 }
  0x4b   :  { %132 = vsyncpa [#allocation6], 1 }
  0x4c   :  { %133 = vsyncpa [#allocation4], 1 }

</bundles_post_ra>
